<compile_context>
chip_gen: v7x
topology: tpu7x:2x2x1
jax: 0.10.0
libtpu: 0.0.40
codegen_flags: <defaults>
</compile_context>

<pallas_src>
import jax
import jax.numpy as jnp
from jax.experimental import pallas as pl
from jax.experimental.pallas import tpu as pltpu

EPS = 1e-10  # swyft OnlineNormalizationLayer default epsilon


def _norm_kernel(f_ref, scale_ref, bias_ref, out_ref):
    """out = f * scale + bias  (== (f - mean) * rsqrt(var + eps)).

    f_ref:     (TB, M) VMEM tile of the concatenated features
    scale_ref: (1, M)  precomputed rsqrt(var + eps), broadcast over batch
    bias_ref:  (1, M)  precomputed -mean * scale,    broadcast over batch
    """
    out_ref[...] = f_ref[...] * scale_ref[...] + bias_ref[...]


def default_head_forward(obs, mean, var, *, block_batch=512):
    """obs: dict[str, (n_batch, m_i)] arrays; mean/var: (M,) running stats.

    Returns the normalized concatenated feature tensor (n_batch, M), f32.
    """
    keys = sorted(obs.keys())
    # Concat in the wrapper: XLA-side layout plumbing, keeps the kernel a pure
    # lane-dense elementwise op on whole (8,128) vregs.
    f = jnp.concatenate([obs[k].astype(jnp.float32) for k in keys], axis=-1)
    B, M = f.shape
    assert mean.shape == (M,) and var.shape == (M,)

    # Batch-invariant stats: fold into a single scale/bias pair once, outside
    # the grid loop (frees EUP + one VPU add per tile).
    scale = jax.lax.rsqrt(var.astype(jnp.float32) + EPS)        # (M,)
    bias = -mean.astype(jnp.float32) * scale                    # (M,)
    scale2d = scale.reshape(1, M)
    bias2d = bias.reshape(1, M)

    # Batch tiling: full-extent block for small batches (exempt from the
    # (8,128) divisibility rule), otherwise a multiple-of-8 tile so DMA and
    # compute pipeline; grid handles a ragged trailing block via cdiv.
    if B <= block_batch:
        tb = B
    else:
        tb = max(8, (block_batch // 8) * 8)
    grid = (pl.cdiv(B, tb),)

    return pl.pallas_call(
        _norm_kernel,
        out_shape=jax.ShapeDtypeStruct((B, M), jnp.float32),
        grid=grid,
        in_specs=[
            pl.BlockSpec((tb, M), lambda i: (i, 0)),   # features, tiled over batch
            pl.BlockSpec((1, M), lambda i: (0, 0)),    # scale, resident
            pl.BlockSpec((1, M), lambda i: (0, 0)),    # bias, resident
        ],
        out_specs=pl.BlockSpec((tb, M), lambda i: (i, 0)),
        compiler_params=pltpu.CompilerParams(
            dimension_semantics=("parallel",),
        ),
    )(f, scale2d, bias2d)


if __name__ == "__main__":
    key = jax.random.PRNGKey(0)

    # DefaultHead only supports 1-dim observations: obs_shapes = {k: (m_k,)}
    obs_shapes = {"a": (48,), "b": (16,), "c": (64,)}  # M = 128 (lane-dense)
    n_batch = 8

    keys = jax.random.split(key, len(obs_shapes) + 2)
    obs = {}
    for i, (name, shp) in enumerate(sorted(obs_shapes.items())):
        obs[name] = jax.random.normal(keys[i], (n_batch, shp[0]), dtype=jnp.float32)

    M = sum(v[0] for v in obs_shapes.values())
    # Deterministic synthetic running stats for the OnlineNormalizationLayer.
    mean = 0.1 * jax.random.normal(keys[-2], (M,), dtype=jnp.float32)
    var = 0.5 + jax.nn.softplus(jax.random.normal(keys[-1], (M,), dtype=jnp.float32))

    out = default_head_forward(obs, mean, var)
    out = jax.block_until_ready(out)

    # Pure-JAX reference check.
    f_ref = jnp.concatenate([obs[k] for k in sorted(obs)], axis=-1)
    ref = (f_ref - mean[None, :]) / jnp.sqrt(var[None, :] + EPS)
    assert out.shape == (n_batch, M)
    assert jnp.allclose(out, ref, atol=1e-5, rtol=1e-5)

    print("KERNEL_OK")
</pallas_src>

<mosaic_0001>
module attributes {stable_mosaic.version = 11 : i64} {
  func.func @_norm_kernel(%arg0: i32, %arg1: memref<8x128xf32, #tpu.memory_space<vmem>>, %arg2: memref<1x128xf32, #tpu.memory_space<vmem>>, %arg3: memref<1x128xf32, #tpu.memory_space<vmem>>, %arg4: memref<8x128xf32, #tpu.memory_space<vmem>>) attributes {dimension_semantics = [#tpu.dimension_semantics<parallel>], iteration_bounds = array<i64: 1>, scalar_prefetch = 0 : i64, scratch_operands = 0 : i64, tpu.core_type = #tpu.core_type<tc>, window_params = [{transform_indices = @transform_0, window_bounds = array<i64: 8, 128>}, {pipeline_mode = #tpu.pipeline_mode<synchronous>, transform_indices = @transform_1, window_bounds = array<i64: 1, 128>}, {pipeline_mode = #tpu.pipeline_mode<synchronous>, transform_indices = @transform_2, window_bounds = array<i64: 1, 128>}, {transform_indices = @transform_3, window_bounds = array<i64: 8, 128>}]} {
    %c0 = arith.constant 0 : index
    %c0_0 = arith.constant 0 : index
    %0 = vector.load %arg1[%c0, %c0_0] : memref<8x128xf32, #tpu.memory_space<vmem>>, vector<8x128xf32>
    %c0_1 = arith.constant 0 : index
    %c0_2 = arith.constant 0 : index
    %1 = vector.load %arg2[%c0_1, %c0_2] : memref<1x128xf32, #tpu.memory_space<vmem>>, vector<1x128xf32>
    %2 = vector.broadcast %1 : vector<1x128xf32> to vector<8x128xf32>
    %3 = arith.mulf %0, %2 : vector<8x128xf32>
    %c0_3 = arith.constant 0 : index
    %c0_4 = arith.constant 0 : index
    %4 = vector.load %arg3[%c0_3, %c0_4] : memref<1x128xf32, #tpu.memory_space<vmem>>, vector<1x128xf32>
    %5 = vector.broadcast %4 : vector<1x128xf32> to vector<8x128xf32>
    %6 = arith.addf %3, %5 : vector<8x128xf32>
    %c0_5 = arith.constant 0 : index
    %c0_6 = arith.constant 0 : index
    %7 = vector.load %arg4[%c0_5, %c0_6] : memref<8x128xf32, #tpu.memory_space<vmem>>, vector<8x128xf32>
    tpu.vector_store %arg4[%c0_5, %c0_6], %6 {strides = array<i32>} : memref<8x128xf32, #tpu.memory_space<vmem>>, vector<8x128xf32>,
    return
  }
  func.func @transform_0(%arg0: i32) -> (i32, i32) {
    %c0_i32 = arith.constant 0 : i32
    %c0_i32_0 = arith.constant 0 : i32
    return %arg0, %c0_i32 : i32, i32
  }
  func.func @transform_1(%arg0: i32) -> (i32, i32) {
    %c0_i32 = arith.constant 0 : i32
    %c0_i32_0 = arith.constant 0 : i32
    %c0_i32_1 = arith.constant 0 : i32
    return %c0_i32, %c0_i32_0 : i32, i32
  }
  func.func @transform_2(%arg0: i32) -> (i32, i32) {
    %c0_i32 = arith.constant 0 : i32
    %c0_i32_0 = arith.constant 0 : i32
    %c0_i32_1 = arith.constant 0 : i32
    return %c0_i32, %c0_i32_0 : i32, i32
  }
  func.func @transform_3(%arg0: i32) -> (i32, i32) {
    %c0_i32 = arith.constant 0 : i32
    %c0_i32_0 = arith.constant 0 : i32
    return %arg0, %c0_i32 : i32, i32
  }
}

</mosaic_0001>

<bundles_post_ra>
// kernel: tpu_custom_call.1
= control target key start
LH: loop header
LB: loop body
LE: loop exit
PB: predicated region body
PF: predicated region fallthrough
CT: control target
= control target key end

     0   :  { %8 = vsyncpa [#allocation3], 0  ;;  %s164_s0 = inlined_call_operand.hbm [shape: f32[8,128], index: 0, kind: input, shape index: {}]   ;;  %s165_s1 = inlined_call_operand.vmem [shape: f32[1,128], index: 1, kind: input, shape index: {}]   ;;  %s166_s2 = inlined_call_operand.vmem [shape: f32[1,128], index: 2, kind: input, shape index: {}]   ;;  %s167_s3 = inlined_call_operand.hbm [shape: f32[8,128], index: 3, kind: output, shape index: {}]  }
   0x1   :  { %9 = vsyncpa [#allocation4], 0  ;;  %s112_s12 = smov [#allocation2]   ;;  %s64_s16 = scalar_lea.hbm %s164_s0, 128 }
   0x2   :  { %s16_s13 = sshll.u32 %s112_s12, 4  ;;  %p65_p0 = scmp.ne.s32.totalorder %s164_s0, %s64_s16  ;;  %s17_s13 = int_to_ptr.vmem [resolvable:$true] %s16_s13 }
   0x3   :  { %p68_p1 = scmp.lt.u32.totalorder %s64_s16, %s164_s0 }
   0x5   :  { %p70_p2 = pnand %p68_p1, %p65_p0 }
   0x7   :  { %73 = shalt.err (!%p70_p2)
}
   0x8   :  { %s74_s21 = scalar_lea.vmem %s17_s13, 128  ;;  %p79_p4 = scmp.lt.s32.totalorder %s17_s13, %s17_s13 }
   0x9   :  { %p75_p3 = scmp.ne.s32.totalorder %s17_s13, %s74_s21  ;;  %p80_p5 = scmp.lt.s32.totalorder %s74_s21, %s74_s21 }
   0xb   :  { %p81_p6 = por %p80_p5, %p79_p4 }
   0xd   :  { %p82_p7 = pnand %p81_p6, %p75_p3 }
   0xf   :  { %85 = shalt.err (!%p82_p7)
}
  0x10   :  { %19 = dma.hbm_to_vmem [thread:$0]  %s164_s0, 128, %s17_s13, [#allocation3]  }
  0x11   :  { %108 = dma.done.wait [#allocation3], 128  }
  0x12   :  { %109 = vsyncadd [#allocation3], 4294967168  ;;  %v27_v0 = vld [vmem:[#allocation2] sm:$0xff]  ;;  %s113_s28 = smov [#allocation5]  }
  0x13   :  { %v60_v1 = vld [vmem:[%s165_s1] ss:$0 sm:$0xff]  ;;  %s51_s29 = sshll.u32 %s113_s28, 4  ;;  %s52_s29 = int_to_ptr.vmem [resolvable:$true] %s51_s29 }
  0x14   :  { %v61_v2 = vld [vmem:[%s166_s2] ss:$0 sm:$0xff]  ;;  %v35_v3 = vmul.f32 %v60_v1, %v27_v0  ;;  %s86_s30 = scalar_lea.vmem %s52_s29, 128  ;;  %p91_p9 = scmp.lt.s32.totalorder %s52_s29, %s52_s29 }
  0x15   :  { %p87_p8 = scmp.ne.s32.totalorder %s52_s29, %s86_s30  ;;  %p92_p10 = scmp.lt.s32.totalorder %s86_s30, %s86_s30 }
  0x16   :  { %v43_v4 = vadd.f32 %v61_v2, %v35_v3 }
  0x17   :  { %p93_p11 = por %p92_p10, %p91_p9 }
  0x18   :  { %44 = vst [vmem:[#allocation5] sm:$0xff] %v43_v4 }
  0x19   :  { %p94_p12 = pnand %p93_p11, %p87_p8 }
  0x1b   :  { %97 = shalt.err (!%p94_p12)
}
  0x1c   :  { %s98_s1 = scalar_lea.hbm %s167_s3, 128 }
  0x1d   :  { %p99_p13 = scmp.ne.s32.totalorder %s167_s3, %s98_s1  ;;  %p102_p0 = scmp.lt.u32.totalorder %s98_s1, %s167_s3 }
  0x1f   :  { %p104_p1 = pnand %p102_p0, %p99_p13 }
  0x21   :  { %107 = shalt.err (!%p104_p1)
}
  0x22   :  { %54 = dma.vmem_to_hbm [thread:$0]  %s52_s29, 128, %s167_s3, [#allocation4]  }
  0x23   :  { %110 = dma.done.wait [#allocation4], 128  }
  0x24   :  { %111 = vsyncadd [#allocation4], 4294967168 }
  0x25   :  { %58 = vsyncpa [#allocation3], 1 }
  0x26   :  { %59 = vsyncpa [#allocation4], 1 }

</bundles_post_ra>
